<compile_context>
chip_gen: v7x
topology: tpu7x:2x2x1
jax: 0.10.0
libtpu: 0.0.40
codegen_flags: <defaults>
</compile_context>

<pallas_src>
import functools

import jax
import jax.numpy as jnp
from jax.experimental import pallas as pl
from jax.experimental.pallas import tpu as pltpu


def _ce_label_smooth_kernel(x_ref, t_ref, o_ref, *, epsilon, num_classes,
                            n_total, block_n):
    i = pl.program_id(0)

    x = x_ref[...].astype(jnp.float32)          # (block_n, C) logits tile
    t = t_ref[...]                              # (block_n, 1) int32 labels tile

    # Numerically stable log-softmax pieces; log_probs never materialized.
    m = jnp.max(x, axis=-1, keepdims=True)
    shifted = x - m                                                      # (bn, C)
    lse = jnp.log(jnp.sum(jnp.exp(shifted), axis=-1, keepdims=True))     # (bn, 1)

    # Fused label-smoothing weights: w = eps/C + (1-eps)*[c == t].
    # sum_c smoothed*log_probs = sum_c w*shifted - lse   (since sum_c w == 1)
    col = jax.lax.broadcasted_iota(jnp.int32, (block_n, num_classes), 1)
    eps = jnp.float32(epsilon)
    unif = eps / jnp.float32(num_classes)
    w = jnp.where(col == t, jnp.float32(1.0) - eps + unif, unif)         # (bn, C)

    per_row = jnp.sum(w * shifted, axis=-1, keepdims=True) - lse         # (bn, 1)

    # Mask rows past the true batch (ragged last block: VMEM contents there are
    # unspecified).  The clipped output writeback also discards them, but the
    # mask guarantees no NaN/garbage is ever stored.
    row_idx = i * block_n + jax.lax.broadcasted_iota(jnp.int32, (block_n, 1), 0)
    o_ref[...] = jnp.where(row_idx < n_total, per_row, 0.0)


def cross_entropy_label_smooth(inputs, targets, *, num_classes, epsilon,
                               block_rows=None):
    """inputs: (N, C) float logits (f32 or bf16); targets: (N,) int labels.

    Returns the scalar f32 label-smoothed cross-entropy loss.
    """
    n, c = inputs.shape
    assert c == num_classes

    itemsize = jnp.dtype(inputs.dtype).itemsize
    # Sublane granularity: 8 rows for 32-bit logits, 16 for 16-bit packing.
    sub = 8 if itemsize >= 4 else 16

    if block_rows is None:
        # Byte-based tile sizing: ~2 MiB per logits buffer (double-buffered by
        # BlockSpec), in the measured 1-4 MiB HBM-roofline sweet spot.
        target_bytes = 2 * 1024 * 1024
        tn = target_bytes // max(1, c * itemsize)
    else:
        tn = int(block_rows)
    tn = max(sub, (tn // sub) * sub)
    n_ceil = ((n + sub - 1) // sub) * sub
    tn = min(tn, n_ceil)
    tn = max(sub, (tn // sub) * sub)
    num_tiles = pl.cdiv(n, tn)

    targets_2d = targets.astype(jnp.int32).reshape(n, 1)

    kernel = functools.partial(
        _ce_label_smooth_kernel,
        epsilon=float(epsilon),
        num_classes=int(num_classes),
        n_total=int(n),
        block_n=int(tn),
    )

    # Explicit VMEM budget: logits tiles (double-buffered) + lane-padded
    # targets/output tiles + f32 temporaries headroom.  Kept <= 64 MiB (v7x
    # physical) and clamped to >= 32 MiB so double-buffering stays alive on
    # v5e's small default scoped limit.
    lane = 128
    vmem_needed = (2 * tn * c * itemsize        # logits tiles
                   + 2 * tn * lane * 4          # target tiles (lane padded)
                   + 2 * tn * lane * 4          # per-row output tiles
                   + 6 * tn * c * 4)            # f32 temporaries headroom
    vmem_limit = int(min(64 * 1024 * 1024,
                         max(32 * 1024 * 1024, vmem_needed + (2 << 20))))

    cost = pl.CostEstimate(
        flops=5 * n * c,
        transcendentals=n * c + n,
        bytes_accessed=n * c * itemsize + n * 4 + n * 4,
    )

    per_row = pl.pallas_call(
        kernel,
        out_shape=jax.ShapeDtypeStruct((n, 1), jnp.float32),
        grid_spec=pltpu.PrefetchScalarGridSpec(
            num_scalar_prefetch=0,
            grid=(num_tiles,),
            in_specs=[
                pl.BlockSpec((tn, c), lambda i: (i, 0)),   # logits tile
                pl.BlockSpec((tn, 1), lambda i: (i, 0)),   # labels tile
            ],
            out_specs=pl.BlockSpec((tn, 1), lambda i: (i, 0)),
        ),
        compiler_params=pltpu.CompilerParams(
            dimension_semantics=("parallel",),   # independent tiles -> megacore OK
            vmem_limit_bytes=vmem_limit,
        ),
        cost_estimate=cost,
    )(inputs, targets_2d)

    # Tiny wrapper-side reduction: (-per_row).mean over the true batch size.
    return -jnp.sum(per_row) / jnp.float32(n)


def _reference(inputs, targets, num_classes, epsilon):
    log_probs = jax.nn.log_softmax(inputs.astype(jnp.float32), axis=1)
    one_hot = jax.nn.one_hot(targets, num_classes, dtype=jnp.float32)
    smoothed = (1.0 - epsilon) * one_hot + epsilon / num_classes
    return (-smoothed * log_probs).mean(0).sum()


if __name__ == "__main__":
    epsilon = 0.1
    key = jax.random.PRNGKey(0)
    k1, k2, k3, k4, k5, k6 = jax.random.split(key, 6)

    # Case 1: lane-dense class dim, forced small tile -> multiple parallel grid
    # steps with per-tile (per-row-block) outputs.
    n1, c1 = 32, 128
    x1 = jax.random.normal(k1, (n1, c1), dtype=jnp.float32)
    t1 = jax.random.randint(k2, (n1,), 0, c1, dtype=jnp.int32)
    loss1 = jax.block_until_ready(
        cross_entropy_label_smooth(x1, t1, num_classes=c1, epsilon=epsilon,
                                   block_rows=8))
    ref1 = _reference(x1, t1, c1, epsilon)
    assert jnp.allclose(loss1, ref1, rtol=1e-5, atol=1e-5), (loss1, ref1)

    # Case 2: ragged batch (no jnp.pad of logits; clipped last block + in-kernel
    # row mask), small class count.
    n2, c2 = 13, 16
    x2 = jax.random.normal(k3, (n2, c2), dtype=jnp.float32)
    t2 = jax.random.randint(k4, (n2,), 0, c2, dtype=jnp.int32)
    loss2 = jax.block_until_ready(
        cross_entropy_label_smooth(x2, t2, num_classes=c2, epsilon=epsilon,
                                   block_rows=8))
    ref2 = _reference(x2, t2, c2, epsilon)
    assert jnp.allclose(loss2, ref2, rtol=1e-5, atol=1e-5), (loss2, ref2)

    # Case 3: bf16 logits (half the HBM reads), byte-based default tile sizing,
    # ragged batch for the 16-row sublane granularity.
    n3, c3 = 24, 128
    x3 = jax.random.normal(k5, (n3, c3), dtype=jnp.float32).astype(jnp.bfloat16)
    t3 = jax.random.randint(k6, (n3,), 0, c3, dtype=jnp.int32)
    loss3 = jax.block_until_ready(
        cross_entropy_label_smooth(x3, t3, num_classes=c3, epsilon=epsilon))
    ref3 = _reference(x3.astype(jnp.float32), t3, c3, epsilon)
    assert jnp.allclose(loss3, ref3, rtol=1e-5, atol=1e-5), (loss3, ref3)

    print("KERNEL_OK")
</pallas_src>

<mosaic_0001>
module attributes {stable_mosaic.version = 11 : i64} {
  func.func @_ce_label_smooth_kernel(%arg0: i32, %arg1: memref<8x128xf32, #tpu.memory_space<vmem>>, %arg2: memref<8x1xi32, #tpu.memory_space<vmem>>, %arg3: memref<8x1xf32, #tpu.memory_space<vmem>>) attributes {dimension_semantics = [#tpu.dimension_semantics<parallel>], iteration_bounds = array<i64: 4>, scalar_prefetch = 0 : i64, scratch_operands = 0 : i64, tpu.core_type = #tpu.core_type<tc>, window_params = [{transform_indices = @transform_0, window_bounds = array<i64: 8, 128>}, {transform_indices = @transform_1, window_bounds = array<i64: 8, 1>}, {transform_indices = @transform_2, window_bounds = array<i64: 8, 1>}]} {
    %c0 = arith.constant 0 : index
    %c0_0 = arith.constant 0 : index
    %0 = vector.load %arg1[%c0, %c0_0] : memref<8x128xf32, #tpu.memory_space<vmem>>, vector<8x128xf32>
    %c0_1 = arith.constant 0 : index
    %c0_2 = arith.constant 0 : index
    %1 = vector.load %arg2[%c0_1, %c0_2] : memref<8x1xi32, #tpu.memory_space<vmem>>, vector<8x1xi32>
    %cst = arith.constant dense<0xFF800000> : vector<8xf32>
    %2 = vector.multi_reduction <maximumf>, %0, %cst [1] : vector<8x128xf32> to vector<8xf32>
    %3 = vector.shape_cast %2 : vector<8xf32> to vector<8x1xf32>
    %4 = vector.broadcast %3 : vector<8x1xf32> to vector<8x128xf32>
    %5 = arith.subf %0, %4 : vector<8x128xf32>
    %6 = math.exp %5 : vector<8x128xf32>
    %cst_3 = arith.constant dense<0.000000e+00> : vector<8xf32>
    %7 = vector.multi_reduction <add>, %6, %cst_3 [1] : vector<8x128xf32> to vector<8xf32>
    %8 = vector.shape_cast %7 : vector<8xf32> to vector<8x1xf32>
    %9 = math.log %8 : vector<8x1xf32>
    %10 = tpu.iota {dimensions = array<i32: 1>} : vector<8x128xi32>
    %cst_4 = arith.constant 1.000000e-01 : f32
    %cst_5 = arith.constant 1.280000e+02 : f32
    %11 = arith.divf %cst_4, %cst_5 : f32
    %12 = vector.broadcast %1 : vector<8x1xi32> to vector<8x128xi32>
    %13 = arith.cmpi eq, %10, %12 : vector<8x128xi32>
    %cst_6 = arith.constant 1.000000e+00 : f32
    %cst_7 = arith.constant 1.000000e-01 : f32
    %14 = arith.subf %cst_6, %cst_7 : f32
    %15 = arith.addf %14, %11 : f32
    %16 = vector.broadcast %15 : f32 to vector<8x128xf32>
    %17 = vector.broadcast %11 : f32 to vector<8x128xf32>
    %18 = arith.select %13, %16, %17 : vector<8x128xi1>, vector<8x128xf32>
    %19 = arith.mulf %18, %5 : vector<8x128xf32>
    %cst_8 = arith.constant dense<0.000000e+00> : vector<8xf32>
    %20 = vector.multi_reduction <add>, %19, %cst_8 [1] : vector<8x128xf32> to vector<8xf32>
    %21 = vector.shape_cast %20 : vector<8xf32> to vector<8x1xf32>
    %22 = arith.subf %21, %9 : vector<8x1xf32>
    %c8_i32 = arith.constant 8 : i32
    %23 = arith.muli %arg0, %c8_i32 : i32
    %24 = tpu.iota {dimensions = array<i32: 0>} : vector<8x1xi32>
    %25 = vector.broadcast %23 : i32 to vector<8x1xi32>
    %26 = arith.addi %25, %24 : vector<8x1xi32>
    %c32_i32 = arith.constant 32 : i32
    %27 = vector.broadcast %c32_i32 : i32 to vector<8x1xi32>
    %28 = arith.cmpi slt, %26, %27 : vector<8x1xi32>
    %cst_9 = arith.constant 0.000000e+00 : f32
    %29 = vector.broadcast %cst_9 : f32 to vector<8x1xf32>
    %30 = arith.select %28, %22, %29 : vector<8x1xi1>, vector<8x1xf32>
    %c0_10 = arith.constant 0 : index
    %c0_11 = arith.constant 0 : index
    %31 = vector.load %arg3[%c0_10, %c0_11] : memref<8x1xf32, #tpu.memory_space<vmem>>, vector<8x1xf32>
    tpu.vector_store %arg3[%c0_10, %c0_11], %30 {strides = array<i32>} : memref<8x1xf32, #tpu.memory_space<vmem>>, vector<8x1xf32>,
    return
  }
  func.func @transform_0(%arg0: i32) -> (i32, i32) {
    %c0_i32 = arith.constant 0 : i32
    %c0_i32_0 = arith.constant 0 : i32
    return %arg0, %c0_i32 : i32, i32
  }
  func.func @transform_1(%arg0: i32) -> (i32, i32) {
    %c0_i32 = arith.constant 0 : i32
    %c0_i32_0 = arith.constant 0 : i32
    return %arg0, %c0_i32 : i32, i32
  }
  func.func @transform_2(%arg0: i32) -> (i32, i32) {
    %c0_i32 = arith.constant 0 : i32
    %c0_i32_0 = arith.constant 0 : i32
    return %arg0, %c0_i32 : i32, i32
  }
}

</mosaic_0001>

<bundles_post_ra>
// kernel: tpu_custom_call.1
= control target key start
LH: loop header
LB: loop body
LE: loop exit
PB: predicated region body
PF: predicated region fallthrough
CT: control target
= control target key end

     0   :  { %s303_s9 = smov 0   ;;  %s333_s0 = inlined_call_operand.vmem [shape: f32[32,128], index: 0, kind: input, shape index: {}]   ;;  %s334_s1 = inlined_call_operand.vmem [shape: s32[32,1], index: 1, kind: input, shape index: {}]   ;;  %s335_s2 = inlined_call_operand.vmem [shape: f32[32,1], index: 2, kind: output, shape index: {}]  }
   0x1 LB: > { %s309_s10 = sadd.s32 4294967295, %s284_s9   ;;  %p256_p0 = scmp.ge.s32.totalorder %s284_s9, 1  ;;  %s284_s9 = sphi %s303_s9, %s12_s9  }
   0x2   : > { %p120_p1 = scmp.lt.s32.totalorder %s284_s9, 5 }
   0x4   : > { %p121_p2 = pnand %p256_p0, %p120_p1 }
   0x5   : > { %p144_p3 = scmp.lt.s32.totalorder (!%p121_p2), %s309_s10, 3  ;;  %v286_v0 = vmov (!%p121_p2), 0   ;;  %v167_v6 = vlaneseq (!%p121_p2)  ;;  %v287_v10 = vmov (!%p121_p2), 0.00078125   ;;  %s260_s19 = sshll.u32 (!%p121_p2), %s309_s10, 3  ;;  %vm185_vm2 = vcmask (!%p121_p2), 7168  }
   0x6   : > { %124 = sbr.rel (%p121_p2) target bundleno = 334 (0x14e), region = 28  ;;  %273 = vset.pattern.permute.xlu0 (!%p121_p2), %v286_v0  ;;  %v181_v15 = vstv (!%p121_p2), %s260_s19 }
   0x7   : > { %v168_v7 = vand.u32 (!%p121_p2), 127, %v167_v6  ;;  %v180_v14 = vshrl.u32 (!%p121_p2), %v167_v6, 7 }
   0x9   : > { %v182_v16 = vadd.s32 (!%p121_p2), %v181_v15, %v180_v14 }
   0xb   : > { %vm183_vm1 = vcmp.lt.s32.totalorder (!%p121_p2), %v182_v16, 32 }
   0xd   : > { %s145_s11 = scalar_select %p144_p3, %s309_s10, 3 }
   0xf   : > { %s315_s12 = sshll.u32 %s145_s11, 3 }
  0x10   : > { %s147_s15 = scalar_lea.vmem %s333_s0, %s315_s12  ;;  %s151_s18 = scalar_lea.vmem %s334_s1, %s315_s12 }
  0x11   : > { %v156_v1 = vld [vmem:[%s147_s15] sm:$0xff]  ;;  %s155_s22 = scalar_lea.vmem %s335_s2, %s315_s12 }
  0x12   : > { %158 = vmax.xlane.f32.xlu0 %v156_v1  ;;  %v157_v2 = vld [vmem:[%s151_s18] sm:$0xff] }
  0x28   : > { %170 = vperm.xlu0 %273, %v157_v2  }
  0x9f   : > { %v159_v3 = vpop.xlane.xlu0 %158 }
  0xa0   : > { %v160_v4 = vsub.f32 %v156_v1, %v159_v3 }
  0xa2   : > { %v161_v5 = vmul.f32 1.442695, %v160_v4 }
  0xa4   : > { %274 = vpow2.f32 %v161_v5 }
  0xa7   : > { %v171_v8 = vpop.permute.xlu0 %170 }
  0xa8   : > { %vm172_vm0 = vcmp.eq.s32.totalorder %v168_v7, %v171_v8 }
  0xa9   : > { %v173_v11 = vsel %vm172_vm0, 0.9007812, %v287_v10 }
  0xaa   : > { %v174_v12 = vmul.f32 %v173_v11, %v160_v4 }
  0xae   : > { %v275_v9 = vpop.eup %274 }
  0xaf   : > { %163 = vadd.xlane.f32.xlu1 %v275_v9 }
  0xb3   : > { %175 = vadd.xlane.f32.xlu1 %v174_v12 }
 0x13c   : > { %v164_v13 = vpop.xlane.xlu1 %163 }
 0x13d   : > { %276 = vlog2.f32 %v164_v13 }
 0x140   : > { %v176_v19 = vpop.xlane.xlu1 %175 }
 0x147   : > { %v277_v17 = vpop.eup %276 }
 0x148   : > { %v166_v18 = vmul.f32 0.6931472, %v277_v17 }
 0x14a   : > { %v177_v20 = vsub.f32 %v176_v19, %v166_v18 }
 0x14c   : > { %v184_v21 = vsel %vm183_vm1, %v177_v20, 0.0 }
 0x14d   : > { %186 = vst.msk [vmem:[%s155_s22] sm:$0xff] %vm185_vm2, %v184_v21 }
 0x14e PF: > { %s12_s9 = sadd.s32 1, %s284_s9  }
 0x14f   : > { %p9_p4 = scmp.ge.s32.totalorder %s12_s9, 6  }
 0x151   :  { %11 = sbr.rel (!%p9_p4) target bundleno = 1 (0x1), region = 61 }

</bundles_post_ra>
